<compile_context>
chip_gen: v6e
topology: v6e:2x2x1
jax: 0.10.0
libtpu: 0.0.40
codegen_flags: <defaults>
</compile_context>

<pallas_src>
import functools

import jax
import jax.numpy as jnp
from jax.experimental import pallas as pl
from jax.experimental.pallas import tpu as pltpu


_PAD_LOGIT = -1.0e4     # masked logits contribute exactly 0 to every sum
_LANE = 128


def _round_up(x, m):
    return ((x + m - 1) // m) * m


def _vmem_capacity_bytes():
    """Best-effort physical VMEM query; conservative (v7x, 64 MiB) fallback."""
    try:
        info = pltpu.get_tpu_info()
        cap = getattr(info, "vmem_capacity_bytes", None)
        if cap:
            return int(cap)
    except Exception:
        pass
    return 64 * 1024 * 1024


def _plan_tiling(n, hw, p_dtype, t_dtype, max_block_bytes=None):
    """Pick (tile_hw, num_chunks, tiles_per_chunk, total_tiles, needs_mask, vmem_limit)."""

    def bytes_per_col(dt):
        # dtype-aware VMEM accounting: sub-32-bit dtypes pack more rows/sublane.
        esize = jnp.dtype(dt).itemsize
        pack = max(1, 4 // max(esize, 1)) * 8          # 8 (f32) / 16 (bf16) / 32 (i8)
        return _round_up(n, pack) * esize              # VMEM bytes per lane-column

    col_bytes = bytes_per_col(p_dtype) + bytes_per_col(t_dtype)

    if max_block_bytes is None:
        vmem_cap = _vmem_capacity_bytes()
        # Budget for the (preds, targets) tile pair per pipeline buffer:
        # large blocks on 128-MiB parts (v5e/v6e), conservative on 64-MiB v7x.
        max_block_bytes = (8 << 20) if vmem_cap >= (100 << 20) else (2 << 20)

    cap_cols = max(_LANE, max_block_bytes // col_bytes)

    if hw <= cap_cols:
        tile_hw = hw                                   # full-dim block: always legal
    else:
        tile_hw = max(_LANE, (cap_cols // _LANE) * _LANE)

    total_tiles = -(-hw // tile_hw)
    num_chunks = 2 if total_tiles >= 2 else 1          # parallel axis for v7x megacore
    tiles_per_chunk = -(-total_tiles // num_chunks)
    needs_mask = (hw % tile_hw != 0) or (num_chunks * tiles_per_chunk != total_tiles)

    # Derived VMEM limit: 2 inputs x 2 pipeline buffers + slack.
    pair_bytes = col_bytes * _round_up(tile_hw, _LANE)
    vmem_limit = int(min(max(16 << 20, 2 * pair_bytes + (4 << 20)), 112 << 20))
    return tile_hw, num_chunks, tiles_per_chunk, total_tiles, needs_mask, vmem_limit


def _combined_loss_kernel(p_ref, t_ref, inter_ref, denom_ref, bce_ref, *,
                          hw, tile_hw, tiles_per_chunk, needs_mask):
    """Grid = (num_chunks, tiles_per_chunk); block = (N, tile_hw) of the (N, HW) view."""
    c = pl.program_id(0)
    j = pl.program_id(1)

    @pl.when(j == 0)
    def _init():
        inter_ref[...] = jnp.zeros_like(inter_ref)
        denom_ref[...] = jnp.zeros_like(denom_ref)
        bce_ref[...] = jnp.zeros_like(bce_ref)

    x = p_ref[...].astype(jnp.float32)     # raw logits, cast per-tile (no wrapper upcast)
    y = t_ref[...].astype(jnp.float32)     # targets in [0, 1]

    if needs_mask:
        # Intended global column index (partial last tile + phantom tiles masked out).
        b = c * tiles_per_chunk + j
        col = b * tile_hw + jax.lax.broadcasted_iota(jnp.int32, x.shape, 1)
        valid = col < hw
        x = jnp.where(valid, x, _PAD_LOGIT)            # sigmoid -> 0, softplus -> 0
        y = jnp.where(valid, y, 0.0)

    # Shared exponential: e = exp(-|x|) serves both sigmoid and softplus.
    #   sigmoid(x) = 1/(1+e)  if x >= 0 else  e/(1+e)
    #   BCEWithLogits(x, y) = max(x, 0) - x*y + log1p(e)
    e = jnp.exp(-jnp.abs(x))
    inv = 1.0 / (1.0 + e)
    s = jnp.where(x >= 0.0, inv, e * inv)
    bce = jnp.maximum(x, 0.0) - x * y + jnp.log1p(e)

    # Per-image lane-axis partial sums accumulated straight into the tiny
    # VMEM-resident output blocks (no block-shaped scratch accumulators).
    inter_ref[...] += jnp.sum(s * y, axis=1, keepdims=True)
    denom_ref[...] += jnp.sum(s + y, axis=1, keepdims=True)
    bce_ref[...] += jnp.sum(bce, axis=1, keepdims=True)


def soft_dice_bce_combined_loss(preds, targets, *, dice_weight=0.5, eps=1.0,
                                max_block_bytes=None):
    """preds, targets: (N, 1, H, W) logits / binary masks.

    Returns the combined loss with shape (N, 1), matching the PyTorch module
    (per-image dice loss broadcast-added with the scalar mean BCE loss).
    """
    N, C, H, W = preds.shape
    assert C == 1, "binary segmentation: C must be 1"
    assert targets.shape == preds.shape
    HW = C * H * W

    p = preds.reshape(N, HW)       # free view of contiguous data; no HBM rewrite
    t = targets.reshape(N, HW)

    (tile_hw, num_chunks, tiles_per_chunk, total_tiles,
     needs_mask, vmem_limit) = _plan_tiling(N, HW, preds.dtype, targets.dtype,
                                            max_block_bytes)

    if num_chunks * tiles_per_chunk == total_tiles:
        def col_index(c, j):
            return (0, c * tiles_per_chunk + j)
    else:
        last = total_tiles - 1

        def col_index(c, j):
            # Phantom tiles of the ceil-split re-read the last real block
            # (safe DMA) and are fully masked inside the kernel.
            return (0, jnp.minimum(c * tiles_per_chunk + j, last))

    kernel = functools.partial(
        _combined_loss_kernel, hw=HW, tile_hw=tile_hw,
        tiles_per_chunk=tiles_per_chunk, needs_mask=needs_mask)

    grid_spec = pltpu.PrefetchScalarGridSpec(
        num_scalar_prefetch=0,
        grid=(num_chunks, tiles_per_chunk),
        in_specs=[
            pl.BlockSpec((N, tile_hw), col_index),
            pl.BlockSpec((N, tile_hw), col_index),
        ],
        out_specs=[
            pl.BlockSpec((None, N, 1), lambda c, j: (c, 0, 0)),   # per-chunk intersection
            pl.BlockSpec((None, N, 1), lambda c, j: (c, 0, 0)),   # per-chunk denom (s + y)
            pl.BlockSpec((None, N, 1), lambda c, j: (c, 0, 0)),   # per-chunk BCE sum
        ],
    )

    out_shape = tuple(jax.ShapeDtypeStruct((num_chunks, N, 1), jnp.float32)
                      for _ in range(3))

    inter_c, denom_c, bce_c = pl.pallas_call(
        kernel,
        out_shape=out_shape,
        grid_spec=grid_spec,
        compiler_params=pltpu.CompilerParams(
            dimension_semantics=("parallel", "arbitrary"),
            vmem_limit_bytes=vmem_limit),
    )(p, t)

    # Trivial scalar combine over chunks in the wrapper (keeps the parallel
    # grid axis race-free across cores).
    inter = jnp.sum(inter_c, axis=0)                   # (N, 1)
    denom = jnp.sum(denom_c, axis=0)                   # (N, 1)
    dice_loss = 1.0 - 2.0 * inter / (denom + float(eps))
    bce_mean = jnp.sum(bce_c) / float(N * HW)
    return dice_weight * dice_loss + (1.0 - dice_weight) * bce_mean


def _reference_loss(preds, targets, dice_weight=0.5, eps=1.0):
    """Pure-JAX reference mirroring the PyTorch module."""
    p = preds.astype(jnp.float32)
    y = targets.astype(jnp.float32)
    s = jax.nn.sigmoid(p)
    inter = jnp.sum(s * y, axis=(2, 3))
    denom = jnp.sum(s, axis=(2, 3)) + jnp.sum(y, axis=(2, 3))
    dice_loss = 1.0 - 2.0 * inter / (denom + eps)                  # (N, 1)
    bce_elem = jnp.maximum(p, 0.0) - p * y + jnp.log1p(jnp.exp(-jnp.abs(p)))
    bce = jnp.mean(bce_elem)                                       # scalar
    return dice_weight * dice_loss + (1.0 - dice_weight) * bce


if __name__ == "__main__":
    key = jax.random.PRNGKey(0)
    k1, k2, k3, k4, k5, k6 = jax.random.split(key, 6)

    # Case 1: small aligned input (N=2, 1, 16, 16) -> single full-dim tile.
    N, C, H, W = 2, 1, 16, 16
    preds = jax.random.normal(k1, (N, C, H, W), dtype=jnp.float32)            # logits
    targets = (jax.random.uniform(k2, (N, C, H, W)) > 0.5).astype(jnp.float32)
    out = jax.block_until_ready(
        soft_dice_bce_combined_loss(preds, targets, dice_weight=0.5, eps=1.0))
    ref = _reference_loss(preds, targets, dice_weight=0.5, eps=1.0)
    assert out.shape == (N, 1)
    assert jnp.allclose(out, ref, atol=1e-4, rtol=1e-4), (out, ref)

    # Case 2: HW not a multiple of 128, single full-dim tile, no wrapper pad.
    N2, H2, W2 = 2, 40, 40
    preds2 = jax.random.normal(k3, (N2, 1, H2, W2), dtype=jnp.float32)
    targets2 = (jax.random.uniform(k4, (N2, 1, H2, W2)) > 0.5).astype(jnp.float32)
    out2 = jax.block_until_ready(
        soft_dice_bce_combined_loss(preds2, targets2, dice_weight=0.3, eps=1.0))
    ref2 = _reference_loss(preds2, targets2, dice_weight=0.3, eps=1.0)
    assert out2.shape == (N2, 1)
    assert jnp.allclose(out2, ref2, atol=1e-4, rtol=1e-4), (out2, ref2)

    # Case 3: force multiple tiles with an odd tile count to exercise the
    # ragged-tail mask, the phantom-tile clamp and the 2-chunk parallel split.
    N3, H3, W3 = 2, 48, 48
    preds3 = jax.random.normal(k5, (N3, 1, H3, W3), dtype=jnp.float32)
    targets3 = (jax.random.uniform(k6, (N3, 1, H3, W3)) > 0.5).astype(jnp.float32)
    out3 = jax.block_until_ready(
        soft_dice_bce_combined_loss(preds3, targets3, dice_weight=0.5, eps=1.0,
                                    max_block_bytes=64 * 1024))
    ref3 = _reference_loss(preds3, targets3, dice_weight=0.5, eps=1.0)
    assert out3.shape == (N3, 1)
    assert jnp.allclose(out3, ref3, atol=1e-4, rtol=1e-4), (out3, ref3)

    print("KERNEL_OK")
</pallas_src>

<mosaic_0001>
module attributes {stable_mosaic.version = 11 : i64} {
  func.func @_combined_loss_kernel(%arg0: i32, %arg1: i32, %arg2: memref<2x256xf32, #tpu.memory_space<vmem>>, %arg3: memref<2x256xf32, #tpu.memory_space<vmem>>, %arg4: memref<1x2x1xf32, #tpu.memory_space<vmem>>, %arg5: memref<1x2x1xf32, #tpu.memory_space<vmem>>, %arg6: memref<1x2x1xf32, #tpu.memory_space<vmem>>) attributes {dimension_semantics = [#tpu.dimension_semantics<parallel>, #tpu.dimension_semantics<arbitrary>], iteration_bounds = array<i64: 1, 1>, scalar_prefetch = 0 : i64, scratch_operands = 0 : i64, tpu.core_type = #tpu.core_type<tc>, window_params = [{transform_indices = @transform_0, window_bounds = array<i64: 2, 256>}, {transform_indices = @transform_1, window_bounds = array<i64: 2, 256>}, {transform_indices = @transform_2, window_bounds = array<i64: 1, 2, 1>}, {transform_indices = @transform_3, window_bounds = array<i64: 1, 2, 1>}, {transform_indices = @transform_4, window_bounds = array<i64: 1, 2, 1>}]} {
    %c0_i32 = arith.constant 0 : i32
    %0 = arith.cmpi eq, %arg1, %c0_i32 : i32
    %1 = arith.extui %0 : i1 to i32
    %c0_i32_0 = arith.constant 0 : i32
    %2 = arith.cmpi ne, %1, %c0_i32_0 : i32
    scf.if %2 {
      %cst_29 = arith.constant 0.000000e+00 : f32
      %49 = vector.broadcast %cst_29 : f32 to vector<2x1xf32>
      %c0_30 = arith.constant 0 : index
      %c0_31 = arith.constant 0 : index
      %c0_32 = arith.constant 0 : index
      %50 = vector.load %arg4[%c0_30, %c0_31, %c0_32] : memref<1x2x1xf32, #tpu.memory_space<vmem>>, vector<1x2x1xf32>
      %51 = vector.shape_cast %50 : vector<1x2x1xf32> to vector<2x1xf32>
      %52 = vector.shape_cast %49 : vector<2x1xf32> to vector<1x2x1xf32>
      tpu.vector_store %arg4[%c0_30, %c0_31, %c0_32], %52 {strides = array<i32>} : memref<1x2x1xf32, #tpu.memory_space<vmem>>, vector<1x2x1xf32>,
      %cst_33 = arith.constant 0.000000e+00 : f32
      %53 = vector.broadcast %cst_33 : f32 to vector<2x1xf32>
      %c0_34 = arith.constant 0 : index
      %c0_35 = arith.constant 0 : index
      %c0_36 = arith.constant 0 : index
      %54 = vector.load %arg5[%c0_34, %c0_35, %c0_36] : memref<1x2x1xf32, #tpu.memory_space<vmem>>, vector<1x2x1xf32>
      %55 = vector.shape_cast %54 : vector<1x2x1xf32> to vector<2x1xf32>
      %56 = vector.shape_cast %53 : vector<2x1xf32> to vector<1x2x1xf32>
      tpu.vector_store %arg5[%c0_34, %c0_35, %c0_36], %56 {strides = array<i32>} : memref<1x2x1xf32, #tpu.memory_space<vmem>>, vector<1x2x1xf32>,
      %cst_37 = arith.constant 0.000000e+00 : f32
      %57 = vector.broadcast %cst_37 : f32 to vector<2x1xf32>
      %c0_38 = arith.constant 0 : index
      %c0_39 = arith.constant 0 : index
      %c0_40 = arith.constant 0 : index
      %58 = vector.load %arg6[%c0_38, %c0_39, %c0_40] : memref<1x2x1xf32, #tpu.memory_space<vmem>>, vector<1x2x1xf32>
      %59 = vector.shape_cast %58 : vector<1x2x1xf32> to vector<2x1xf32>
      %60 = vector.shape_cast %57 : vector<2x1xf32> to vector<1x2x1xf32>
      tpu.vector_store %arg6[%c0_38, %c0_39, %c0_40], %60 {strides = array<i32>} : memref<1x2x1xf32, #tpu.memory_space<vmem>>, vector<1x2x1xf32>,
    } else {
    }
    %c0 = arith.constant 0 : index
    %c0_1 = arith.constant 0 : index
    %3 = vector.load %arg2[%c0, %c0_1] : memref<2x256xf32, #tpu.memory_space<vmem>>, vector<2x256xf32>
    %c0_2 = arith.constant 0 : index
    %c0_3 = arith.constant 0 : index
    %4 = vector.load %arg3[%c0_2, %c0_3] : memref<2x256xf32, #tpu.memory_space<vmem>>, vector<2x256xf32>
    %5 = math.absf %3 : vector<2x256xf32>
    %cst = arith.constant 0.000000e+00 : f32
    %6 = vector.broadcast %cst : f32 to vector<2x256xf32>
    %7 = arith.subf %6, %5 : vector<2x256xf32>
    %8 = math.exp %7 : vector<2x256xf32>
    %cst_4 = arith.constant 1.000000e+00 : f32
    %9 = vector.broadcast %cst_4 : f32 to vector<2x256xf32>
    %10 = arith.addf %9, %8 : vector<2x256xf32>
    %cst_5 = arith.constant 1.000000e+00 : f32
    %11 = vector.broadcast %cst_5 : f32 to vector<2x256xf32>
    %12 = arith.divf %11, %10 : vector<2x256xf32>
    %cst_6 = arith.constant 0.000000e+00 : f32
    %13 = vector.broadcast %cst_6 : f32 to vector<2x256xf32>
    %14 = arith.cmpf oge, %3, %13 : vector<2x256xf32>
    %15 = arith.mulf %8, %12 : vector<2x256xf32>
    %16 = arith.select %14, %12, %15 : vector<2x256xi1>, vector<2x256xf32>
    %cst_7 = arith.constant 0.000000e+00 : f32
    %17 = vector.broadcast %cst_7 : f32 to vector<2x256xf32>
    %18 = arith.maximumf %3, %17 : vector<2x256xf32>
    %19 = arith.mulf %3, %4 : vector<2x256xf32>
    %20 = arith.subf %18, %19 : vector<2x256xf32>
    %21 = math.log1p %8 : vector<2x256xf32>
    %22 = arith.addf %20, %21 : vector<2x256xf32>
    %c0_8 = arith.constant 0 : index
    %c0_9 = arith.constant 0 : index
    %c0_10 = arith.constant 0 : index
    %23 = vector.load %arg4[%c0_8, %c0_9, %c0_10] : memref<1x2x1xf32, #tpu.memory_space<vmem>>, vector<1x2x1xf32>
    %24 = vector.shape_cast %23 : vector<1x2x1xf32> to vector<2x1xf32>
    %25 = arith.mulf %16, %4 : vector<2x256xf32>
    %cst_11 = arith.constant dense<0.000000e+00> : vector<2xf32>
    %26 = vector.multi_reduction <add>, %25, %cst_11 [1] : vector<2x256xf32> to vector<2xf32>
    %27 = vector.shape_cast %26 : vector<2xf32> to vector<2x1xf32>
    %28 = arith.addf %24, %27 : vector<2x1xf32>
    %c0_12 = arith.constant 0 : index
    %c0_13 = arith.constant 0 : index
    %c0_14 = arith.constant 0 : index
    %29 = vector.load %arg4[%c0_12, %c0_13, %c0_14] : memref<1x2x1xf32, #tpu.memory_space<vmem>>, vector<1x2x1xf32>
    %30 = vector.shape_cast %29 : vector<1x2x1xf32> to vector<2x1xf32>
    %31 = vector.shape_cast %28 : vector<2x1xf32> to vector<1x2x1xf32>
    tpu.vector_store %arg4[%c0_12, %c0_13, %c0_14], %31 {strides = array<i32>} : memref<1x2x1xf32, #tpu.memory_space<vmem>>, vector<1x2x1xf32>,
    %c0_15 = arith.constant 0 : index
    %c0_16 = arith.constant 0 : index
    %c0_17 = arith.constant 0 : index
    %32 = vector.load %arg5[%c0_15, %c0_16, %c0_17] : memref<1x2x1xf32, #tpu.memory_space<vmem>>, vector<1x2x1xf32>
    %33 = vector.shape_cast %32 : vector<1x2x1xf32> to vector<2x1xf32>
    %34 = arith.addf %16, %4 : vector<2x256xf32>
    %cst_18 = arith.constant dense<0.000000e+00> : vector<2xf32>
    %35 = vector.multi_reduction <add>, %34, %cst_18 [1] : vector<2x256xf32> to vector<2xf32>
    %36 = vector.shape_cast %35 : vector<2xf32> to vector<2x1xf32>
    %37 = arith.addf %33, %36 : vector<2x1xf32>
    %c0_19 = arith.constant 0 : index
    %c0_20 = arith.constant 0 : index
    %c0_21 = arith.constant 0 : index
    %38 = vector.load %arg5[%c0_19, %c0_20, %c0_21] : memref<1x2x1xf32, #tpu.memory_space<vmem>>, vector<1x2x1xf32>
    %39 = vector.shape_cast %38 : vector<1x2x1xf32> to vector<2x1xf32>
    %40 = vector.shape_cast %37 : vector<2x1xf32> to vector<1x2x1xf32>
    tpu.vector_store %arg5[%c0_19, %c0_20, %c0_21], %40 {strides = array<i32>} : memref<1x2x1xf32, #tpu.memory_space<vmem>>, vector<1x2x1xf32>,
    %c0_22 = arith.constant 0 : index
    %c0_23 = arith.constant 0 : index
    %c0_24 = arith.constant 0 : index
    %41 = vector.load %arg6[%c0_22, %c0_23, %c0_24] : memref<1x2x1xf32, #tpu.memory_space<vmem>>, vector<1x2x1xf32>
    %42 = vector.shape_cast %41 : vector<1x2x1xf32> to vector<2x1xf32>
    %cst_25 = arith.constant dense<0.000000e+00> : vector<2xf32>
    %43 = vector.multi_reduction <add>, %22, %cst_25 [1] : vector<2x256xf32> to vector<2xf32>
    %44 = vector.shape_cast %43 : vector<2xf32> to vector<2x1xf32>
    %45 = arith.addf %42, %44 : vector<2x1xf32>
    %c0_26 = arith.constant 0 : index
    %c0_27 = arith.constant 0 : index
    %c0_28 = arith.constant 0 : index
    %46 = vector.load %arg6[%c0_26, %c0_27, %c0_28] : memref<1x2x1xf32, #tpu.memory_space<vmem>>, vector<1x2x1xf32>
    %47 = vector.shape_cast %46 : vector<1x2x1xf32> to vector<2x1xf32>
    %48 = vector.shape_cast %45 : vector<2x1xf32> to vector<1x2x1xf32>
    tpu.vector_store %arg6[%c0_26, %c0_27, %c0_28], %48 {strides = array<i32>} : memref<1x2x1xf32, #tpu.memory_space<vmem>>, vector<1x2x1xf32>,
    return
  }
  func.func @transform_0(%arg0: i32, %arg1: i32) -> (i32, i32) {
    %c1_i32 = arith.constant 1 : i32
    %0 = arith.muli %arg0, %c1_i32 : i32
    %1 = arith.addi %0, %arg1 : i32
    %c0_i32 = arith.constant 0 : i32
    %c0_i32_0 = arith.constant 0 : i32
    return %c0_i32, %1 : i32, i32
  }
  func.func @transform_1(%arg0: i32, %arg1: i32) -> (i32, i32) {
    %c1_i32 = arith.constant 1 : i32
    %0 = arith.muli %arg0, %c1_i32 : i32
    %1 = arith.addi %0, %arg1 : i32
    %c0_i32 = arith.constant 0 : i32
    %c0_i32_0 = arith.constant 0 : i32
    return %c0_i32, %1 : i32, i32
  }
  func.func @transform_2(%arg0: i32, %arg1: i32) -> (i32, i32, i32) {
    %c0_i32 = arith.constant 0 : i32
    %c0_i32_0 = arith.constant 0 : i32
    %c0_i32_1 = arith.constant 0 : i32
    return %arg0, %c0_i32, %c0_i32_0 : i32, i32, i32
  }
  func.func @transform_3(%arg0: i32, %arg1: i32) -> (i32, i32, i32) {
    %c0_i32 = arith.constant 0 : i32
    %c0_i32_0 = arith.constant 0 : i32
    %c0_i32_1 = arith.constant 0 : i32
    return %arg0, %c0_i32, %c0_i32_0 : i32, i32, i32
  }
  func.func @transform_4(%arg0: i32, %arg1: i32) -> (i32, i32, i32) {
    %c0_i32 = arith.constant 0 : i32
    %c0_i32_0 = arith.constant 0 : i32
    %c0_i32_1 = arith.constant 0 : i32
    return %arg0, %c0_i32, %c0_i32_0 : i32, i32, i32
  }
}

</mosaic_0001>

<bundles_post_ra>
// kernel: tpu_custom_call.1
= control target key start
LH: loop header
LB: loop body
LE: loop exit
PB: predicated region body
PF: predicated region fallthrough
CT: control target
= control target key end

     0   :  { %10 = vsyncpa [#allocation3], 0  ;;  %s280_s0 = inlined_call_operand.hbm [shape: f32[2,256], index: 0, kind: input, shape index: {}]   ;;  %s281_s1 = inlined_call_operand.hbm [shape: f32[2,256], index: 1, kind: input, shape index: {}]   ;;  %s282_s2 = inlined_call_operand.vmem [shape: f32[1,2,1], index: 2, kind: output, shape index: {0}]   ;;  %s283_s3 = inlined_call_operand.vmem [shape: f32[1,2,1], index: 3, kind: output, shape index: {1}]   ;;  %s284_s4 = inlined_call_operand.vmem [shape: f32[1,2,1], index: 4, kind: output, shape index: {2}]  }
   0x1   :  { %11 = vsyncpa [#allocation5], 0  ;;  %s212_s15 = smov [#allocation2]   ;;  %s213_s17 = smov [#allocation4]  }
   0x2   :  { %s22_s16 = sshll.u32 %s212_s15, 4  ;;  %s36_s18 = sshll.u32 %s213_s17, 4  ;;  %s23_s16 = int_to_ptr.vmem [resolvable:$true] %s22_s16  ;;  %s37_s18 = int_to_ptr.vmem [resolvable:$true] %s36_s18 }
   0x3   :  { %s176_s19 = scalar_lea.vmem %s23_s16, 64  ;;  %p181_p1 = scmp.lt.s32.totalorder %s23_s16, %s23_s16 }
   0x4   :  { %p177_p0 = scmp.ne.s32.totalorder %s23_s16, %s176_s19  ;;  %p182_p2 = scmp.lt.s32.totalorder %s176_s19, %s176_s19 }
   0x6   :  { %p183_p3 = por %p182_p2, %p181_p1 }
   0x8   :  { %p184_p4 = pnand %p183_p3, %p177_p0 }
   0xa   :  { %187 = shalt.err (!%p184_p4)
}
   0xb   :  { %25 = dma.hbm_to_vmem [thread:$0]  %s280_s0, 64, %s23_s16, [#allocation3]  }
   0xc   :  { %s196_s22 = scalar_lea.vmem %s37_s18, 64  ;;  %p201_p6 = scmp.lt.s32.totalorder %s37_s18, %s37_s18 }
   0xd   :  { %p197_p5 = scmp.ne.s32.totalorder %s37_s18, %s196_s22  ;;  %p202_p7 = scmp.lt.s32.totalorder %s196_s22, %s196_s22 }
   0xf   :  { %p203_p8 = por %p202_p7, %p201_p6 }
  0x11   :  { %p204_p9 = pnand %p203_p8, %p197_p5 }
  0x13   :  { %207 = shalt.err (!%p204_p9)
}
  0x14   :  { %39 = dma.hbm_to_vmem [thread:$0]  %s281_s1, 64, %s37_s18, [#allocation5]  }
  0x15   :  { %208 = dma.done.wait [#allocation3], 64  }
  0x16   :  { %209 = vsyncadd [#allocation3], 4294967232 }
  0x17   :  { %210 = dma.done.wait [#allocation5], 64  }
  0x18   :  { %211 = vsyncadd [#allocation5], 4294967232  ;;  %vm54_vm0 = vcmask 1024   ;;  %v214_v0 = vmov 0.0   ;;  %v58_v1 = vld [vmem:[#allocation2] sm:$0xf]  ;;  %v89_v11 = vlaneseq }
  0x19   :  { %55 = vst.msk [vmem:[%s282_s2] sm:$0x3] %vm54_vm0, %v214_v0  ;;  %56 = vst.msk [vmem:[%s283_s3] sm:$0x3] %vm54_vm0, %v214_v0  ;;  %v60_v2 = vand.u32 2147483647, %v58_v1 }
  0x1a   :  { %57 = vst.msk [vmem:[%s284_s4] sm:$0x3] %vm54_vm0, %v214_v0  ;;  %v59_v8 = vld [vmem:[#allocation4] sm:$0xf]  ;;  %v215_v9 = vmov 1983009808  }
  0x1b   :  { %v61_v3 = vsub.f32 0.0, %v60_v2  ;;  %v87_v10 = vunpack.c.l.s4 %v215_v9  ;;  %v70_v13 = vmax.f32 %v58_v1, 0.0  ;;  %v71_v14 = vmul.f32 %v59_v8, %v58_v1 }
  0x1c   :  { %v90_v17 = vshrl.u32 %v89_v11, 7  ;;  %vm67_vm1 = vcmp.ge.f32.partialorder %v58_v1, 0.0  ;;  %vm96_vm3 = vcmask 1041408  }
  0x1d   :  { %v62_v4 = vmul.f32 1.442695, %v61_v3  ;;  %v88_v16 = vunpack.c.0.s8 %v87_v10  ;;  %v72_v22 = vsub.f32 %v70_v13, %v71_v14 }
  0x1f   :  { %162 = vpow2.f32 %v62_v4  ;;  %v91_v23 = vsub.s32 %v88_v16, %v90_v17 }
  0x20   :  { %v83_v45 = vld [vmem:[%s282_s2] sm:$0x3] }
  0x21   :  { %v125_v46 = vld [vmem:[%s284_s4] sm:$0x3] }
  0x22   :  { %v105_v51 = vld [vmem:[%s283_s3] sm:$0x3] }
  0x2c   :  { %v163_v5 = vpop.eup %162 }
  0x2d   :  { %v64_v6 = vadd.f32 1.0, %v163_v5  ;;  %v76_v7 = vmul.f32 -0.5, %v163_v5  ;;  %v79_v15 = vand.u32 2147483647, %v163_v5 }
  0x2f   :  { %164 = vrcp.f32 %v64_v6  ;;  %v77_v12 = vadd.f32 1.0, %v76_v7  ;;  %vm80_vm2 = vcmp.lt.f32.partialorder %v79_v15, 0.0004427343 }
  0x30   :  { %166 = vlog2.f32 %v64_v6 }
  0x31   :  { %v78_v19 = vmul.f32 %v163_v5, %v77_v12 }
  0x3c   :  { %v165_v18 = vpop.eup %164 }
  0x3d   :  { %v167_v20 = vpop.eup %166  ;;  %v68_v21 = vmul.f32 %v165_v18, %v163_v5 }
  0x3e   :  { %v75_v24 = vmul.f32 0.6931472, %v167_v20 }
  0x3f   :  { %v69_v25 = vsel %vm67_vm1, %v165_v18, %v68_v21 }
  0x40   :  { %v84_v26 = vmul.f32 %v69_v25, %v59_v8  ;;  %v81_v27 = vsel %vm80_vm2, %v78_v19, %v75_v24  ;;  %v106_v28 = vadd.f32 %v69_v25, %v59_v8 }
  0x41   :  { %v82_v29 = vadd.f32 %v81_v27, %v72_v22 }
  0x42   :  { %v92_v30 = vrot.slane %v84_v26, %v91_v23  ;;  %v114_v31 = vrot.slane %v106_v28, %v91_v23 }
  0x43   :  { %v133_v32 = vrot.slane %v82_v29, %v91_v23 }
  0x44   :  { %v93_v33 = vcombine.high %v92_v30, %v92_v30  ;;  %v97_v34 = vsel %vm96_vm3, %v92_v30, 0.0  ;;  %v115_v35 = vcombine.high %v114_v31, %v114_v31  ;;  %v118_v39 = vsel %vm96_vm3, %v114_v31, 0.0 }
  0x45   :  { %v134_v36 = vcombine.high %v133_v32, %v133_v32  ;;  %v137_v37 = vsel %vm96_vm3, %v133_v32, 0.0 }
  0x46   :  { %v98_v38 = vsel %vm96_vm3, %v93_v33, 0.0  ;;  %v119_v40 = vsel %vm96_vm3, %v115_v35, 0.0 }
  0x47   :  { %v99_v41 = vadd.f32 %v98_v38, %v97_v34  ;;  %v138_v42 = vsel %vm96_vm3, %v134_v36, 0.0  ;;  %v120_v44 = vadd.f32 %v119_v40, %v118_v39 }
  0x48   :  { %v139_v43 = vadd.f32 %v138_v42, %v137_v37 }
  0x49   :  { %100 = vadd.xlane.f32.xlu0 %v99_v41 }
  0x4a   :  { %140 = vadd.xlane.f32.xlu1 %v139_v43 }
  0x4d   :  { %121 = vadd.xlane.f32.xlu0 %v120_v44 }
  0xd2   :  { %v101_v47 = vpop.xlane.xlu0 %100 }
  0xd3   :  { %v102_v48 = vadd.f32 %v101_v47, %v83_v45  ;;  %v141_v49 = vpop.xlane.xlu1 %140 }
  0xd4   :  { %v142_v50 = vadd.f32 %v141_v49, %v125_v46 }
  0xd5   :  { %104 = vst.msk [vmem:[%s282_s2] sm:$0x3] %vm54_vm0, %v102_v48 }
  0xd6   :  { %143 = vst.msk [vmem:[%s284_s4] sm:$0x3] %vm54_vm0, %v142_v50  ;;  %v122_v52 = vpop.xlane.xlu0 %121 }
  0xd7   :  { %v123_v53 = vadd.f32 %v122_v52, %v105_v51 }
  0xd9   :  { %124 = vst.msk [vmem:[%s283_s3] sm:$0x3] %vm54_vm0, %v123_v53 }
  0xda   :  { %156 = vsyncpa [#allocation3], 1 }
  0xdb   :  { %157 = vsyncpa [#allocation5], 1 }

</bundles_post_ra>
